<compile_context>
chip_gen: v7x
topology: tpu7x:2x2x1
jax: 0.10.0
libtpu: 0.0.40
codegen_flags: <defaults>
</compile_context>

<pallas_src>
import jax
import jax.numpy as jnp
import numpy as np
from jax.experimental import pallas as pl
from jax.experimental.pallas import tpu as pltpu


# ------------------------------- Pallas kernel ------------------------------------
def _ffn_kernel(x_ref, w1_ref, b1_ref, w2_ref, b2_ref, o_ref, acc_ref):
    k = pl.program_id(1)                      # hidden-dim (reduction) grid axis

    @pl.when(k == 0)
    def _init():
        acc_ref[...] = jnp.zeros_like(acc_ref)

    # dense1 + bias + ReLU for this chunk of the hidden dim (bf16 MXU, f32 accumulate).
    h = jnp.dot(x_ref[...], w1_ref[...], preferred_element_type=jnp.float32)
    h = jnp.maximum(h + b1_ref[...], 0.0)

    # dense2 partial product for this hidden chunk, accumulated in f32.
    acc_ref[...] += jnp.dot(h.astype(w2_ref.dtype), w2_ref[...],
                            preferred_element_type=jnp.float32)

    @pl.when(k == pl.num_programs(1) - 1)
    def _finalize():
        o_ref[...] = (acc_ref[...] + b2_ref[...]).astype(o_ref.dtype)


# ------------------------------- helpers -------------------------------------------
def _round_up(a, b):
    return ((a + b - 1) // b) * b


def _pad2d(a, rows, cols):
    pr, pc = rows - a.shape[0], cols - a.shape[1]
    if pr or pc:
        a = jnp.pad(a, ((0, pr), (0, pc)))
    return a


def _block_spec(shape, index_map, *, single_buffer=False):
    # Single-buffer constant-index blocks (resident weights/biases); double-buffering
    # them only doubles their VMEM footprint. Falls back cleanly if the installed
    # Pallas does not expose pipeline_mode.
    if single_buffer:
        try:
            return pl.BlockSpec(shape, index_map, pipeline_mode=pl.Buffered(1))
        except (TypeError, AttributeError):
            pass
    return pl.BlockSpec(shape, index_map)


# ------------------------------- wrapper -------------------------------------------
def position_wise_ffn(x, w1, b1, w2, b2, *, row_tile=512,
                      matmul_dtype=jnp.bfloat16,
                      resident_weight_bytes=8 * 1024 * 1024,
                      hidden_tile=512):
    """Mirrors PositionWiseFFN.forward: dense2(relu(dense1(X))).

    x : (..., D). Weights stored (in, out): w1 (D, F), w2 (F, O); biases (1, F)/(1, O)
    (equivalent to PyTorch nn.Linear with the weight transposed).
    """
    D = x.shape[-1]
    F = w1.shape[-1]
    O = w2.shape[-1]
    lead = x.shape[:-1]
    M = 1
    for s in lead:
        M *= int(s)
    out_dtype = x.dtype
    mm_bytes = jnp.dtype(matmul_dtype).itemsize

    # ---- lane-dense padding of hidden / output dims (weight-only pads; exact) -------
    Fp = _round_up(F, 128)
    Op = _round_up(O, 128)

    if (D * Fp + Fp * Op) * mm_bytes <= resident_weight_bytes:
        Fc = Fp                                  # whole weights resident, single k step
    else:
        Fc = max(128, _round_up(min(hidden_tile, Fp), 128))
        Fp = _round_up(Fp, Fc)                   # hidden tile must divide padded hidden
    grid_k = Fp // Fc

    w1p = _pad2d(w1, D, Fp).astype(matmul_dtype)
    b1p = _pad2d(b1.reshape(1, -1), 1, Fp).astype(jnp.float32)
    w2p = _pad2d(w2, Fp, Op).astype(matmul_dtype)
    b2p = _pad2d(b2.reshape(1, -1), 1, Op).astype(jnp.float32)

    # ---- row tiling: no wrapper-side row pad; >=2 tiles when possible (v7x) ---------
    x2d = x.reshape(M, D).astype(matmul_dtype)
    if M <= 8:
        tm = 8
    else:
        tm = min(row_tile, _round_up(pl.cdiv(M, 2), 8))
    # keep the live (tm, Fc) f32 intermediate modest (v5e scoped-VMEM / spill concern)
    cap = max(8, ((2 * 1024 * 1024) // (4 * Fc)) // 8 * 8)
    tm = max(8, min(tm, cap))
    grid_m = pl.cdiv(M, tm)

    single_buffer = (grid_k == 1)                # constant block index across the grid
    wbuf = 1 if single_buffer else 2

    # ---- VMEM budget: only raise the scoped limit when the default would be tight ---
    est_vmem = (2 * tm * D * mm_bytes                        # x blocks (double-buffered)
                + wbuf * (D * Fc + Fc * Op) * mm_bytes       # W1 / W2 blocks
                + wbuf * Fc * 4 + Op * 4                     # b1 / b2 (f32)
                + 2 * tm * Op * jnp.dtype(out_dtype).itemsize  # output blocks
                + tm * Op * 4                                # accumulator scratch
                + 2 * tm * Fc * 4)                           # live f32 intermediate
    cp_kwargs = dict(dimension_semantics=("parallel", "arbitrary"))
    if est_vmem > 12 * 1024 * 1024:
        cp_kwargs["vmem_limit_bytes"] = int(min(est_vmem * 3 // 2 + (1 << 20),
                                                64 * 1024 * 1024))

    out2d = pl.pallas_call(
        _ffn_kernel,
        out_shape=jax.ShapeDtypeStruct((M, Op), out_dtype),
        grid_spec=pltpu.PrefetchScalarGridSpec(
            num_scalar_prefetch=0,
            grid=(grid_m, grid_k),                  # reduction (hidden) axis innermost
            in_specs=[
                pl.BlockSpec((tm, D), lambda i, k: (i, 0)),                      # x rows
                _block_spec((D, Fc), lambda i, k: (0, k), single_buffer=single_buffer),
                _block_spec((1, Fc), lambda i, k: (0, k), single_buffer=single_buffer),
                _block_spec((Fc, Op), lambda i, k: (k, 0), single_buffer=single_buffer),
                _block_spec((1, Op), lambda i, k: (0, 0), single_buffer=True),
            ],
            out_specs=pl.BlockSpec((tm, Op), lambda i, k: (i, 0)),
            scratch_shapes=[pltpu.VMEM((tm, Op), jnp.float32)],
        ),
        compiler_params=pltpu.CompilerParams(**cp_kwargs),
    )(x2d, w1p, b1p, w2p, b2p)

    if Op != O:
        out2d = out2d[:, :O]
    return out2d.reshape(*lead, O)


# ------------------------------- pure-JAX reference --------------------------------
def _reference(x, w1, b1, w2, b2):
    return jnp.maximum(x @ w1 + b1, 0.0) @ w2 + b2


# ------------------------------- main -----------------------------------------------
if __name__ == "__main__":
    # batch, seq, ffn_num_input, ffn_num_hiddens, ffn_num_outputs
    B, T, D, F, O = 2, 8, 32, 64, 32

    key = jax.random.PRNGKey(0)
    ks = jax.random.split(key, 5)
    x = jax.random.normal(ks[0], (B, T, D), dtype=jnp.float32)
    w1 = (0.1 * jax.random.normal(ks[1], (D, F))).astype(jnp.float32)
    b1 = (0.1 * jax.random.normal(ks[2], (1, F))).astype(jnp.float32)
    w2 = (0.1 * jax.random.normal(ks[3], (F, O))).astype(jnp.float32)
    b2 = (0.1 * jax.random.normal(ks[4], (1, O))).astype(jnp.float32)

    out = position_wise_ffn(x, w1, b1, w2, b2)
    out = jax.block_until_ready(out)

    ref = _reference(x, w1, b1, w2, b2)
    # bf16 MXU operands (f32 accumulation) -> looser tolerance than the pure-f32 version.
    np.testing.assert_allclose(np.asarray(out), np.asarray(ref), rtol=5e-2, atol=2e-2)

    print("KERNEL_OK")
</pallas_src>

<mosaic_0001>
module attributes {stable_mosaic.version = 11 : i64} {
  func.func @_ffn_kernel(%arg0: i32, %arg1: i32, %arg2: memref<8x32xbf16, #tpu.memory_space<vmem>>, %arg3: memref<32x128xbf16, #tpu.memory_space<vmem>>, %arg4: memref<1x128xf32, #tpu.memory_space<vmem>>, %arg5: memref<128x128xbf16, #tpu.memory_space<vmem>>, %arg6: memref<1x128xf32, #tpu.memory_space<vmem>>, %arg7: memref<8x128xf32, #tpu.memory_space<vmem>>, %arg8: memref<8x128xf32, #tpu.memory_space<vmem>>) attributes {dimension_semantics = [#tpu.dimension_semantics<parallel>, #tpu.dimension_semantics<arbitrary>], iteration_bounds = array<i64: 2, 1>, scalar_prefetch = 0 : i64, scratch_operands = 1 : i64, tpu.core_type = #tpu.core_type<tc>, window_params = [{transform_indices = @transform_0, window_bounds = array<i64: 8, 32>}, {pipeline_mode = #tpu.pipeline_mode<synchronous>, transform_indices = @transform_1, window_bounds = array<i64: 32, 128>}, {pipeline_mode = #tpu.pipeline_mode<synchronous>, transform_indices = @transform_2, window_bounds = array<i64: 1, 128>}, {pipeline_mode = #tpu.pipeline_mode<synchronous>, transform_indices = @transform_3, window_bounds = array<i64: 128, 128>}, {pipeline_mode = #tpu.pipeline_mode<synchronous>, transform_indices = @transform_4, window_bounds = array<i64: 1, 128>}, {transform_indices = @transform_5, window_bounds = array<i64: 8, 128>}]} {
    %c0_i32 = arith.constant 0 : i32
    %0 = arith.cmpi eq, %arg1, %c0_i32 : i32
    %1 = arith.extui %0 : i1 to i32
    %c0_i32_0 = arith.constant 0 : i32
    %2 = arith.cmpi ne, %1, %c0_i32_0 : i32
    scf.if %2 {
      %cst_16 = arith.constant 0.000000e+00 : f32
      %20 = vector.broadcast %cst_16 : f32 to vector<8x128xf32>
      %c0_17 = arith.constant 0 : index
      %c0_18 = arith.constant 0 : index
      %21 = vector.load %arg8[%c0_17, %c0_18] : memref<8x128xf32, #tpu.memory_space<vmem>>, vector<8x128xf32>
      tpu.vector_store %arg8[%c0_17, %c0_18], %20 {strides = array<i32>} : memref<8x128xf32, #tpu.memory_space<vmem>>, vector<8x128xf32>,
    } else {
    }
    %c0 = arith.constant 0 : index
    %c0_1 = arith.constant 0 : index
    %3 = vector.load %arg2[%c0, %c0_1] : memref<8x32xbf16, #tpu.memory_space<vmem>>, vector<8x32xbf16>
    %c0_2 = arith.constant 0 : index
    %c0_3 = arith.constant 0 : index
    %4 = vector.load %arg3[%c0_2, %c0_3] : memref<32x128xbf16, #tpu.memory_space<vmem>>, vector<32x128xbf16>
    %cst = arith.constant dense<0.000000e+00> : vector<8x128xf32>
    %5 = tpu.matmul %3, %4, %cst {dimension_numbers = #tpu.dot_dimension_numbers<[1], [0], [0], [1], [0, 0, 1, 1], [], []>} : vector<8x32xbf16>, vector<32x128xbf16>, vector<8x128xf32> -> vector<8x128xf32>
    %c0_4 = arith.constant 0 : index
    %c0_5 = arith.constant 0 : index
    %6 = vector.load %arg4[%c0_4, %c0_5] : memref<1x128xf32, #tpu.memory_space<vmem>>, vector<1x128xf32>
    %7 = vector.broadcast %6 : vector<1x128xf32> to vector<8x128xf32>
    %8 = arith.addf %5, %7 : vector<8x128xf32>
    %cst_6 = arith.constant 0.000000e+00 : f32
    %9 = vector.broadcast %cst_6 : f32 to vector<8x128xf32>
    %10 = arith.maximumf %8, %9 : vector<8x128xf32>
    %c0_7 = arith.constant 0 : index
    %c0_8 = arith.constant 0 : index
    %11 = vector.load %arg8[%c0_7, %c0_8] : memref<8x128xf32, #tpu.memory_space<vmem>>, vector<8x128xf32>
    %12 = arith.truncf %10 : vector<8x128xf32> to vector<8x128xbf16>
    %c0_9 = arith.constant 0 : index
    %c0_10 = arith.constant 0 : index
    %13 = vector.load %arg5[%c0_9, %c0_10] : memref<128x128xbf16, #tpu.memory_space<vmem>>, vector<128x128xbf16>
    %cst_11 = arith.constant dense<0.000000e+00> : vector<8x128xf32>
    %14 = tpu.matmul %12, %13, %cst_11 {dimension_numbers = #tpu.dot_dimension_numbers<[1], [0], [0], [1], [0, 0, 1, 1], [], []>} : vector<8x128xbf16>, vector<128x128xbf16>, vector<8x128xf32> -> vector<8x128xf32>
    %15 = arith.addf %11, %14 : vector<8x128xf32>
    %c0_12 = arith.constant 0 : index
    %c0_13 = arith.constant 0 : index
    %16 = vector.load %arg8[%c0_12, %c0_13] : memref<8x128xf32, #tpu.memory_space<vmem>>, vector<8x128xf32>
    tpu.vector_store %arg8[%c0_12, %c0_13], %15 {strides = array<i32>} : memref<8x128xf32, #tpu.memory_space<vmem>>, vector<8x128xf32>,
    %c0_i32_14 = arith.constant 0 : i32
    %17 = arith.cmpi eq, %arg1, %c0_i32_14 : i32
    %18 = arith.extui %17 : i1 to i32
    %c0_i32_15 = arith.constant 0 : i32
    %19 = arith.cmpi ne, %18, %c0_i32_15 : i32
    scf.if %19 {
      %c0_16 = arith.constant 0 : index
      %c0_17 = arith.constant 0 : index
      %20 = vector.load %arg8[%c0_16, %c0_17] : memref<8x128xf32, #tpu.memory_space<vmem>>, vector<8x128xf32>
      %c0_18 = arith.constant 0 : index
      %c0_19 = arith.constant 0 : index
      %21 = vector.load %arg6[%c0_18, %c0_19] : memref<1x128xf32, #tpu.memory_space<vmem>>, vector<1x128xf32>
      %22 = vector.broadcast %21 : vector<1x128xf32> to vector<8x128xf32>
      %23 = arith.addf %20, %22 : vector<8x128xf32>
      %c0_20 = arith.constant 0 : index
      %c0_21 = arith.constant 0 : index
      %24 = vector.load %arg7[%c0_20, %c0_21] : memref<8x128xf32, #tpu.memory_space<vmem>>, vector<8x128xf32>
      tpu.vector_store %arg7[%c0_20, %c0_21], %23 {strides = array<i32>} : memref<8x128xf32, #tpu.memory_space<vmem>>, vector<8x128xf32>,
    } else {
    }
    return
  }
  func.func @transform_0(%arg0: i32, %arg1: i32) -> (i32, i32) {
    %c0_i32 = arith.constant 0 : i32
    %c0_i32_0 = arith.constant 0 : i32
    return %arg0, %c0_i32 : i32, i32
  }
  func.func @transform_1(%arg0: i32, %arg1: i32) -> (i32, i32) {
    %c0_i32 = arith.constant 0 : i32
    %c0_i32_0 = arith.constant 0 : i32
    return %c0_i32, %arg1 : i32, i32
  }
  func.func @transform_2(%arg0: i32, %arg1: i32) -> (i32, i32) {
    %c0_i32 = arith.constant 0 : i32
    %c0_i32_0 = arith.constant 0 : i32
    return %c0_i32, %arg1 : i32, i32
  }
  func.func @transform_3(%arg0: i32, %arg1: i32) -> (i32, i32) {
    %c0_i32 = arith.constant 0 : i32
    %c0_i32_0 = arith.constant 0 : i32
    return %arg1, %c0_i32 : i32, i32
  }
  func.func @transform_4(%arg0: i32, %arg1: i32) -> (i32, i32) {
    %c0_i32 = arith.constant 0 : i32
    %c0_i32_0 = arith.constant 0 : i32
    %c0_i32_1 = arith.constant 0 : i32
    return %c0_i32, %c0_i32_0 : i32, i32
  }
  func.func @transform_5(%arg0: i32, %arg1: i32) -> (i32, i32) {
    %c0_i32 = arith.constant 0 : i32
    %c0_i32_0 = arith.constant 0 : i32
    return %arg0, %c0_i32 : i32, i32
  }
}

</mosaic_0001>

<bundles_post_ra>
// kernel: tpu_custom_call.1
= control target key start
LH: loop header
LB: loop body
LE: loop exit
PB: predicated region body
PF: predicated region fallthrough
CT: control target
= control target key end

     0   :  { %10 = vsyncpa [#allocation4], 0  ;;  %s1271_s0 = inlined_call_operand.hbm [shape: bf16[16,32], index: 0, kind: input, shape index: {}]   ;;  %s1272_s1 = inlined_call_operand.hbm [shape: bf16[32,128], index: 1, kind: input, shape index: {}]   ;;  %s1273_s2 = inlined_call_operand.vmem [shape: f32[1,128], index: 2, kind: input, shape index: {}]   ;;  %s1274_s3 = inlined_call_operand.hbm [shape: bf16[128,128], index: 3, kind: input, shape index: {}]   ;;  %s1275_s4 = inlined_call_operand.vmem [shape: f32[1,128], index: 4, kind: input, shape index: {}]   ;;  %s1276_s5 = inlined_call_operand.hbm [shape: f32[16,128], index: 5, kind: output, shape index: {}]  }
   0x1   :  { %12 = vsyncpa [#allocation4 + $0x1], 0 }
   0x2   :  { %13 = vsyncpa [#allocation7], 0 }
   0x3   :  { %14 = vsyncpa [#allocation5], 0 }
   0x4   :  { %16 = vsyncpa [#allocation5 + $0x1], 0  ;;  %s1014_s18 = smov 0   ;;  %s1016_s19 = smov 0  }
   0x5   :  { %s1018_s20 = smov 0   ;;  %s1020_s21 = smov 0  }
   0x6   :  { %s1022_s22 = smov 0   ;;  %s1024_s23 = smov 0  }
   0x7 LB: > { %s634_s24 = sadd.s32 4294967295, %s974_s23   ;;  %s635_s25 = sadd.s32 4294967294, %s974_s23   ;;  %s974_s23 = sphi %s1024_s23, %s22_s23   ;;  %s970_s22 = sphi %s1022_s22, %s1298_s22   ;;  %s966_s21 = sphi %s1020_s21, %s1297_s21   ;;  %s962_s20 = sphi %s1018_s20, %s1296_s20   ;;  %s958_s19 = sphi %s1016_s19, %s1295_s19   ;;  %s954_s18 = sphi %s1014_s18, %s1294_s18  }
   0x8   : > { %p54_p0 = scmp.ne.s32.totalorder %s958_s19, %s954_s18  ;;  %p1048_p1 = scmp.eq.s32.totalorder %s634_s24, 0 }
   0x9   : > { %p1052_p2 = scmp.eq.s32.totalorder %s634_s24, 1  ;;  %p183_p3 = scmp.eq.s32.totalorder %s635_s25, 1 }
   0xa   : > { %s1281_s26 = scalar_select %p1048_p1, 1, 0 }
   0xb   : > { %p1058_p4 = por %p1048_p1, %p54_p0  ;;  %p636_p5 = scmp.ge.s32.totalorder %s974_s23, 1 }
   0xc   : > { %p1063_p6 = por %p183_p3, %p54_p0  ;;  %p190_p7 = scmp.lt.s32.totalorder %s974_s23, 3 }
   0xd   : > { %s1283_s28 = scalar_select %p1058_p4, 1, 0 }
   0xe   : > { %s1284_s29 = scalar_select %p1063_p6, 1, 0 }
   0xf   : > { %p1068_p8 = pnand %p636_p5, %p190_p7  ;;  %s976_s6 = smov [#allocation6]  }
  0x10   : > { %s204_s7 = sshll.u32 %s976_s6, 4  ;;  %s977_s9 = smov [#allocation8]   ;;  %s1072_s7 = int_to_ptr.vmem [resolvable:$true] %s204_s7 }
  0x11   : > { %p717_p9 = pneg %p1068_p8  ;;  %s226_s10 = sshll.u32 %s977_s9, 4  ;;  %s1083_s10 = int_to_ptr.vmem [resolvable:$true] %s226_s10 }
  0x12   : > { %s802_s13 = scalar_lea.hbm %s1272_s1, 256 }
  0x13   : > { %p1079_p11 = pnand %p717_p9, %p1048_p1  ;;  %p803_p12 = scmp.ne.s32.totalorder %s1272_s1, %s802_s13 }
  0x14   : > { %p809_p5 = scmp.lt.u32.totalorder %s802_s13, %s1272_s1 }
  0x15   : > { %p804_p13 = pneg %p1079_p11 }
  0x17   : > { %p805_p0 = pnand %p804_p13, %p803_p12 }
  0x19   : > { %p806_p3 = pneg %p805_p0 }
  0x1b   : > { %p811_p7 = pnand %p809_p5, %p806_p3 }
  0x1d   : > { %814 = shalt.err (!%p811_p7)
}
  0x1e   : > { %s815_s24 = scalar_lea.vmem %s1072_s7, 256  ;;  %p823_p1 = scmp.lt.s32.totalorder %s1072_s7, %s1072_s7 }
  0x1f   : > { %p816_p9 = scmp.ne.s32.totalorder %s1072_s7, %s815_s24  ;;  %p824_p12 = scmp.lt.s32.totalorder %s815_s24, %s815_s24 }
  0x21   : > { %p818_p10 = pnand %p816_p9, %p804_p13  ;;  %p825_p0 = por %p824_p12, %p823_p1 }
  0x23   : > { %p819_p6 = pneg %p818_p10 }
  0x25   : > { %p826_p4 = pnand %p825_p0, %p819_p6 }
  0x27   : > { %829 = shalt.err (!%p826_p4)
}
  0x28   : > { %s978_s25 = smov 64   ;;  %s979_s6 = smov 4  }
  0x29   : > { %720 = dma.hbm_to_vmem [thread:$0]  (!%p1079_p11), %s1272_s1, 256, %s1072_s7, [#allocation7], %s978_s25, %s978_s25, %s979_s6  }
  0x2a   : > { %s830_s14 = scalar_lea.hbm %s1274_s3, 1024 }
  0x2b   : > { %p831_p1 = scmp.ne.s32.totalorder %s1274_s3, %s830_s14  ;;  %p837_p10 = scmp.lt.u32.totalorder %s830_s14, %s1274_s3 }
  0x2d   : > { %p833_p4 = pnand %p831_p1, %p804_p13 }
  0x2f   : > { %p834_p6 = pneg %p833_p4 }
  0x31   : > { %p839_p3 = pnand %p837_p10, %p834_p6 }
  0x33   : > { %842 = shalt.err (!%p839_p3)
}
  0x34   : > { %s843_s7 = scalar_lea.vmem %s1083_s10, 1024  ;;  %p851_p12 = scmp.lt.s32.totalorder %s1083_s10, %s1083_s10 }
  0x35   : > { %p844_p5 = scmp.ne.s32.totalorder %s1083_s10, %s843_s7  ;;  %p852_p0 = scmp.lt.s32.totalorder %s843_s7, %s843_s7 }
  0x37   : > { %p846_p7 = pnand %p844_p5, %p804_p13  ;;  %p853_p1 = por %p852_p0, %p851_p12 }
  0x39   : > { %p847_p9 = pneg %p846_p7 }
  0x3b   : > { %p854_p4 = pnand %p853_p1, %p847_p9 }
  0x3d   : > { %857 = shalt.err (!%p854_p4)
}
  0x3e   : > { %723 = dma.hbm_to_vmem [thread:$0]  (!%p1079_p11), %s1274_s3, 1024, %s1083_s10, [#allocation7], %s978_s25, %s978_s25, %s979_s6  }
  0x3f   : > { %s34_s12 = sadd.s32 1, %s970_s22  ;;  %s41_s13 = sadd.s32 1, %s962_s20 }
  0x40   : > { %p36_p13 = scmp.ge.s32.totalorder %s34_s12, 2  ;;  %p48_p6 = scmp.ne.s32.totalorder %s962_s20, %s958_s19 }
  0x41   : > { %p49_p10 = scmp.eq.s32.totalorder %s974_s23, 0  ;;  %p734_p3 = scmp.lt.s32.totalorder %s974_s23, 2 }
  0x42   : > { %s1300_s12 = smov (%p36_p13, %s34_s12), 0  ;;  %p1147_p7 = por %p1052_p2, %p48_p6 }
  0x43   : > { %p50_p5 = por %p49_p10, %p48_p6  ;;  %s38_s14 = ssub.s32 %s970_s22, %s1300_s12 }
  0x44   : > { %s1287_s8 = scalar_select %p1147_p7, 1, 0 }
  0x45   : > { %s243_s15 = sand.u32 1, %s962_s20   ;;  %p39_p9 = scmp.eq.s32.totalorder %s38_s14, 0 }
  0x46   : > { %s641_s10 = sshll.u32 %s243_s15, 2  ;;  %s642_s25 = sshll.u32 %s970_s22, 6 }
  0x47   : > { %s1156_s6 = scalar_select %p39_p9, %s962_s20, %s41_s13  }
  0x48   : > { %s1161_s24 = scalar_lea.hbm %s1271_s0, %s642_s25  ;;  %s247_s27 = scalar_lea.vmem [#allocation3], %s641_s10 }
  0x49   : > { %s254_s7 = sshll.u32 %s247_s27, 4  ;;  %p1165_p2 = pnand %p734_p3, %p50_p5  ;;  %s1169_s7 = int_to_ptr.vmem [resolvable:$true] %s254_s7 }
  0x4a   : > { %s244_s11 = scalar_lea.sflag [#allocation4], %s243_s15  ;;  %s858_s13 = scalar_lea.hbm %s1161_s24, 64 }
  0x4b   : > { %p859_p11 = scmp.ne.s32.totalorder %s1161_s24, %s858_s13  ;;  %p860_p12 = pneg %p1165_p2 }
  0x4c   : > { %s863_s25 = scalar_lea.hbm %s1271_s0, 128  ;;  %p864_p4 = scmp.lt.u32.totalorder %s1161_s24, %s1271_s0 }
  0x4d   : > { %p861_p0 = pnand %p860_p12, %p859_p11  ;;  %p865_p13 = scmp.lt.u32.totalorder %s863_s25, %s858_s13 }
  0x4e   : > { %p867_p10 = scmp.lt.u32.totalorder %s858_s13, %s1161_s24 }
  0x4f   : > { %p862_p1 = pneg %p861_p0  ;;  %p866_p6 = por %p865_p13, %p864_p4 }
  0x51   : > { %p868_p3 = por %p867_p10, %p866_p6 }
  0x53   : > { %p869_p5 = pnand %p868_p3, %p862_p1 }
  0x55   : > { %872 = shalt.err (!%p869_p5)
}
  0x56   : > { %s873_s15 = scalar_lea.vmem %s1169_s7, 64  ;;  %s980_s27 = smov [#allocation3]  }
  0x57   : > { %p874_p9 = scmp.ne.s32.totalorder %s1169_s7, %s873_s15  ;;  %s878_s14 = sshll.u32 %s980_s27, 4  ;;  %s879_s14 = int_to_ptr.vmem [resolvable:$false] %s878_s14 }
  0x58   : > { %s880_s10 = scalar_lea.vmem %s879_s14, 128  ;;  %p881_p7 = scmp.lt.s32.totalorder %s1169_s7, %s879_s14 }
  0x59   : > { %p876_p11 = pnand %p874_p9, %p860_p12  ;;  %p882_p4 = scmp.lt.s32.totalorder %s880_s10, %s873_s15 }
  0x5b   : > { %p877_p0 = pneg %p876_p11  ;;  %p883_p13 = por %p882_p4, %p881_p7 }
  0x5d   : > { %p884_p6 = pnand %p883_p13, %p877_p0 }
  0x5f   : > { %887 = shalt.err (!%p884_p6)
}
  0x60   : > { %727 = dma.hbm_to_vmem [thread:$0]  (!%p1165_p2), %s1161_s24, 64, %s1169_s7, %s244_s11  }
  0x61   : > { %263 = sbr.rel (%p1068_p8) target bundleno = 564 (0x234), region = 40  ;;  %s1199_s13 = sand.u32 (!%p1068_p8), 1, %s958_s19  }
  0x62   : > { %s644_s25 = sshll.u32 (!%p1068_p8), %s1199_s13, 2  ;;  %s266_s16 = scalar_lea.sflag (!%p1068_p8), [#allocation4], %s1199_s13 }
  0x63   : > { %s269_s17 = scalar_lea.vmem (!%p1068_p8), [#allocation3], %s644_s25  ;;  %p1289_p7 = scmp.ne.s32.totalorder (!%p1068_p8), %s1283_s28, 0 }
  0x68   : > { %941 = dma.done.wait (%p1289_p7), %s266_s16, 64  }
  0x69   : > { %943 = vsyncadd (%p1289_p7), %s266_s16, 4294967232  ;;  %p1290_p12 = scmp.ne.s32.totalorder %s1281_s26, 0 }
  0x6b   : > { %945 = dma.done.wait (%p1290_p12), [#allocation7], 1280  }
  0x6c   : > { %947 = vsyncadd (%p1290_p12), [#allocation7], 4294966016  ;;  %v981_v0 = vmov 0.0   ;;  %vm982_vm0 = vmmov 0   ;;  %v792_v1 = vld [vmem:[#allocation6] sm:$0xff]   ;;  %v793_v2 = vld [vmem:[#allocation6 + $0x8] sm:$0xff]  }
  0x6d   : > { %677 = vmatprep.subr.bf16.mxu0 %v981_v0  ;;  %681 = vmatprep.mubr.msk.bf16.mxu0 %vm982_vm0, %v981_v0  ;;  %v794_v3 = vld [vmem:[#allocation8] sm:$0xff]   ;;  %vm341_vm1 = vcmask 261120   ;;  %v795_v4 = vld [vmem:[#allocation8 + $0x8] sm:$0xff]   ;;  %v796_v6 = vld [vmem:[#allocation8 + $0x10] sm:$0xff]   ;;  %s647_s30 = sshll.u32 %s1199_s13, 3  ;;  %s662_s9 = sshll.u32 %s966_s21, 7 }
  0x6e   : > { %685 = vmatprep.subr.bf16.mxu1 %v981_v0  ;;  %701 = vmatprep.mubr.msk.bf16.mxu1 %vm982_vm0, %v981_v0  ;;  %v317_v5 = vld [vmem:[%s269_s17] sm:$0xf]  ;;  %v797_v7 = vld [vmem:[#allocation8 + $0x18] sm:$0xff]   ;;  %v798_v8 = vld [vmem:[#allocation8 + $0x20] sm:$0xff]   ;;  %s306_s11 = scalar_lea.vmem [#allocation9], %s647_s30  ;;  %s1222_s10 = scalar_lea.hbm %s1276_s5, %s662_s9 }
  0x6f   : > { %678 = vmatpush3.bf16.msra.mxu0 %v792_v1  ;;  %686 = vmatpush3.bf16.msra.mxu1 %v794_v3  ;;  %v799_v9 = vld [vmem:[#allocation8 + $0x28] sm:$0xff]   ;;  %v800_v10 = vld [vmem:[#allocation8 + $0x30] sm:$0xff]   ;;  %v801_v11 = vld [vmem:[#allocation8 + $0x38] sm:$0xff]   ;;  %s521_s15 = sshll.u32 %s306_s11, 4  ;;  %s508_s25 = scalar_lea.sflag [#allocation5], %s1199_s13  ;;  %s1224_s15 = int_to_ptr.vmem [resolvable:$true] %s521_s15 }
  0x70   : > { %679 = vmatprep.subr.bf16.mxu0 %v981_v0  ;;  %687 = vmatprep.subr.bf16.mxu1 %v981_v0  ;;  %v648_v12 = vld [vmem:[%s1273_s2] ss:$0 sm:$0xff]  ;;  %s888_s21 = scalar_lea.vmem %s1224_s15, 128  ;;  %p1291_p2 = scmp.ne.s32.totalorder %s1287_s8, 0 }
  0x71   : > { %v660_v20 = vld [vmem:[%s1275_s4] ss:$0 sm:$0xff]  ;;  %p889_p8 = scmp.ne.s32.totalorder %s1224_s15, %s888_s21  ;;  %s983_s16 = smov [#allocation9]  }
  0x72   : > { %s892_s17 = sshll.u32 %s983_s16, 4  ;;  %s893_s17 = int_to_ptr.vmem [resolvable:$false] %s892_s17 }
  0x73   : > { %680 = vmatpush3.bf16.msra.mxu0 %v793_v2  ;;  %688 = vmatpush3.bf16.msra.mxu1 %v795_v4  ;;  %p890_p1 = pnand %p889_p8, %p1291_p2  ;;  %s894_s26 = scalar_lea.vmem %s893_s17, 256 }
  0x74   : > { %689 = vmatprep.subr.bf16.mxu1 %v981_v0  ;;  %p895_p3 = scmp.lt.s32.totalorder %s1224_s15, %s893_s17  ;;  %p896_p5 = scmp.lt.s32.totalorder %s894_s26, %s888_s21 }
  0x75   : > { %p891_p10 = pneg %p890_p1 }
  0x76   : > { %682 = vmatmul.mubr.msk.bf16.vlgmr.msra.gmra.mrb[0].mxu0 %vm341_vm1, %v317_v5  ;;  %p897_p9 = por %p896_p5, %p895_p3 }
  0x77   : > { %690 = vmatpush3.bf16.msra.mxu1 %v796_v6 }
  0x78   : > { %691 = vmatprep.subr.bf16.mxu1 %v981_v0  ;;  %p898_p11 = pnand %p897_p9, %p891_p10 }
  0x7b   : > { %692 = vmatpush3.bf16.msra.mxu1 %v797_v7 }
  0x7c   : > { %693 = vmatprep.subr.bf16.mxu1 %v981_v0 }
  0x7f   : > { %694 = vmatpush3.bf16.msra.mxu1 %v798_v8 }
  0x80   : > { %695 = vmatprep.subr.bf16.mxu1 %v981_v0 }
  0x83   : > { %696 = vmatpush3.bf16.msra.mxu1 %v799_v9 }
  0x84   : > { %697 = vmatprep.subr.bf16.mxu1 %v981_v0 }
  0x87   : > { %698 = vmatpush3.bf16.msra.mxu1 %v800_v10 }
  0x88   : > { %699 = vmatprep.subr.bf16.mxu1 %v981_v0 }
  0x8b   : > { %700 = vmatpush3.bf16.msra.mxu1 %v801_v11 }
 0x149   : > { %v379_v13 = vpop.f32.mrb[0].mxu0 }
 0x14a   : > { %v380_v14 = vadd.f32 %v648_v12, %v379_v13  ;;  %v683_v15 = vpop.f32.mrb[1].mxu0 }
 0x14b   : > { %v382_v16 = vpop.f32.mrb[2].mxu0 }
 0x14c   : > { %v385_v17 = vmax.f32 %v380_v14, 0.0  ;;  %v684_v18 = vpop.f32.mrb[3].mxu0 }
 0x14e   : > { %v387_v19 = vpack.c.bf16 %v385_v17, %v385_v17 }
 0x150   : > { %702 = vmatmul.mubr.bf16.vlgmr.msra.gmra.mrb[0].mxu1 %v387_v19 }
 0x223   : > { %v486_v21 = vpop.f32.mrb[0].mxu1 }
 0x224   : > { %v505_v22 = vadd.f32 %v660_v20, %v486_v21  ;;  %v703_v23 = vpop.f32.mrb[1].mxu1 }
 0x225   : > { %v489_v24 = vpop.f32.mrb[2].mxu1 }
 0x226   : > { %506 = vst [vmem:[%s306_s11] sm:$0xff] %v505_v22  ;;  %v704_v25 = vpop.f32.mrb[3].mxu1 }
 0x227   : > { %901 = shalt.err (!%p898_p11)
}
 0x228   : > { %s902_s13 = scalar_lea.hbm %s1222_s10, 128  ;;  %s906_s24 = scalar_lea.hbm %s1276_s5, 256 }
 0x229   : > { %p903_p0 = scmp.ne.s32.totalorder %s1222_s10, %s902_s13  ;;  %p907_p6 = scmp.lt.u32.totalorder %s1222_s10, %s1276_s5 }
 0x22a   : > { %p908_p7 = scmp.lt.u32.totalorder %s906_s24, %s902_s13  ;;  %p910_p8 = scmp.lt.u32.totalorder %s902_s13, %s1222_s10 }
 0x22b   : > { %p904_p4 = pnand %p903_p0, %p1291_p2 }
 0x22c   : > { %p909_p12 = por %p908_p7, %p907_p6 }
 0x22d   : > { %p905_p13 = pneg %p904_p4 }
 0x22e   : > { %p911_p1 = por %p910_p8, %p909_p12 }
 0x230   : > { %p912_p10 = pnand %p911_p1, %p905_p13 }
 0x232   : > { %915 = shalt.err (!%p912_p10)
}
 0x233   : > { %715 = dma.vmem_to_hbm [thread:$0]  (%p1291_p2), %s1224_s15, 128, %s1222_s10, %s508_s25  }
 0x234 PF: > { %s533_s11 = sand.u32 1, %s954_s18   ;;  %p1292_p3 = scmp.ne.s32.totalorder %s1284_s29, 0 }
 0x235   : > { %p1293_p5 = scmp.ge.s32.totalorder %s974_s23, 2  ;;  %s534_s27 = scalar_lea.sflag [#allocation5], %s533_s11 }
 0x237   : > { %p729_p9 = pnand %p1293_p5, %p1292_p3 }
 0x239   : > { %949 = dma.done.wait (!%p729_p9), %s534_s27, 128  }
 0x23a   : > { %951 = vsyncadd (!%p729_p9), %s534_s27, 4294967168  ;;  %s22_s23 = sadd.s32 1, %s974_s23   ;;  %s1294_s18 = smov %s958_s19 }
 0x23b   : > { %p19_p11 = scmp.ge.s32.totalorder %s22_s23, 4   ;;  %s1295_s19 = smov %s962_s20 }
 0x23c   : > { %s1296_s20 = smov %s1156_s6  ;;  %s1297_s21 = smov %s970_s22 }
 0x23d   : > { %s1298_s22 = smov %s1300_s12  ;;  %21 = sbr.rel (!%p19_p11) target bundleno = 7 (0x7), region = 106 }
 0x244   :  { %539 = vsyncpa [#allocation4], 1 }
 0x245   :  { %541 = vsyncpa [#allocation4 + $0x1], 1 }
 0x246   :  { %542 = vsyncpa [#allocation7], 1 }
 0x247   :  { %543 = vsyncpa [#allocation5], 1 }
 0x248   :  { %545 = vsyncpa [#allocation5 + $0x1], 1 }

</bundles_post_ra>
